<compile_context>
chip_gen: v6e
topology: v6e:2x2x1
jax: 0.10.0
libtpu: 0.0.40
codegen_flags: <defaults>
</compile_context>

<pallas_src>
import functools

import jax
import jax.numpy as jnp
from jax.experimental import pallas as pl
from jax.experimental.pallas import tpu as pltpu


def _round_up(x, m):
    return ((x + m - 1) // m) * m


def _qnet_kernel(n_layers, x_ref, *refs):
    """MLP forward on one batch tile.

    refs layout: (w_0..w_{L-1}, b_0..b_{L-1}, out_ref)
      w_l: (fan_in_pad, fan_out_pad) bf16, VMEM-resident
      b_l: (1, fan_out_pad) f32
    """
    w_refs = refs[:n_layers]
    b_refs = refs[n_layers:2 * n_layers]
    out_ref = refs[2 * n_layers]

    h = x_ref[...]                                     # bf16 (tb, in0)
    for li in range(n_layers):
        acc = jnp.dot(h.astype(jnp.bfloat16), w_refs[li][...],
                      preferred_element_type=jnp.float32)
        acc = acc + b_refs[li][...]                    # f32 bias row, broadcasts
        if li < n_layers - 1:                          # ReLU on hidden layers only
            acc = jnp.maximum(acc, 0.0)
        h = acc
    out_ref[...] = h.astype(out_ref.dtype)


def qnetwork_forward(x, ws_p, bs_p, action_size, *, tile_b=256):
    """x: (B, state_size) f32.
    ws_p: list of (fan_in_pad, fan_out_pad) bf16 weights (lane-padded, see
          pad_and_cast_params). bs_p: matching (1, fan_out_pad) f32 biases.
    Returns (B, action_size) f32 Q-values."""
    B, state_size = x.shape
    n_layers = len(ws_p)
    a_pad = int(ws_p[-1].shape[1])

    # Batch tile: multiple of 8 sublanes, never larger than the padded batch.
    tb = max(8, _round_up(min(int(tile_b), B), 8))
    b_pad = _round_up(B, tb)
    num_tiles = b_pad // tb

    xb = x.astype(jnp.bfloat16)
    if b_pad != B:
        xb = jnp.pad(xb, ((0, b_pad - B), (0, 0)))

    # BlockSpecs: activations tiled over batch; params full-extent with constant
    # block index -> DMA'd once, resident in VMEM across grid steps.
    in_specs = [pl.BlockSpec((tb, state_size), lambda i: (i, 0))]
    for w in ws_p:
        in_specs.append(pl.BlockSpec(tuple(int(d) for d in w.shape),
                                     lambda i: (0, 0)))
    for b in bs_p:
        in_specs.append(pl.BlockSpec(tuple(int(d) for d in b.shape),
                                     lambda i: (0, 0)))
    out_spec = pl.BlockSpec((tb, a_pad), lambda i: (i, 0))

    # Advisory cost estimate for the enclosing XLA schedule.
    flops = 2 * b_pad * sum(int(w.shape[0]) * int(w.shape[1]) for w in ws_p)
    param_bytes = (sum(int(w.size) * 2 for w in ws_p)
                   + sum(int(b.size) * 4 for b in bs_p))
    bytes_accessed = 2 * b_pad * state_size + param_bytes + 4 * b_pad * a_pad
    cost = pl.CostEstimate(flops=flops, transcendentals=0,
                           bytes_accessed=bytes_accessed)

    # Megacore sharding only pays off with >=2 tiles of non-trivial work.
    semantics = ("parallel",) if (num_tiles >= 2 and tb >= 256) else ("arbitrary",)
    cparams = {"dimension_semantics": semantics}

    # VMEM estimate (Pallas double-buffers operand blocks). Only raise the scoped
    # limit if a large tile actually needs it (v7x: 64 MiB physical).
    vmem_est = 2 * (tb * state_size * 2 + tb * a_pad * 4) + 2 * param_bytes
    if vmem_est > (24 << 20):
        cparams["vmem_limit_bytes"] = int(min(vmem_est * 3 // 2 + (4 << 20),
                                              64 << 20))

    kernel = functools.partial(_qnet_kernel, n_layers)
    out = pl.pallas_call(
        kernel,
        out_shape=jax.ShapeDtypeStruct((b_pad, a_pad), jnp.float32),
        grid=(num_tiles,),
        in_specs=in_specs,
        out_specs=out_spec,
        compiler_params=pltpu.CompilerParams(**cparams),
        cost_estimate=cost,
    )(xb, *ws_p, *bs_p)

    return out[:B, :action_size]


def init_params(key, state_size, action_size, fc_units=(64, 64)):
    """Deterministic init matching nn.Linear defaults (weights stored (in, out),
    i.e. transposed from PyTorch so every layer is y = x @ W + b)."""
    dims = [state_size, *fc_units, action_size]
    n_layers = len(dims) - 1
    ks = jax.random.split(key, 2 * n_layers)
    ws, bs = [], []
    for li in range(n_layers):
        fan_in, fan_out = dims[li], dims[li + 1]
        bound = 1.0 / jnp.sqrt(fan_in)
        w = jax.random.uniform(ks[2 * li], (fan_in, fan_out), jnp.float32,
                               -bound, bound)
        b = jax.random.uniform(ks[2 * li + 1], (fan_out,), jnp.float32,
                               -bound, bound)
        ws.append(w)
        bs.append(b)
    return ws, bs


def pad_and_cast_params(ws, bs, *, lane_pad=128):
    """Zero-pad every layer's fan_out to a multiple of `lane_pad` (and the next
    layer's fan_in rows to match), so every matmul RHS is lane-dense. Weights are
    stored bf16 (MXU-native); biases stay f32 (the add runs in f32)."""
    n = len(ws)
    ws_p, bs_p = [], []
    prev_out_pad = int(ws[0].shape[0])        # first fan_in (state_size), unpadded
    for li in range(n):
        fan_in, fan_out = int(ws[li].shape[0]), int(ws[li].shape[1])
        out_pad = _round_up(fan_out, lane_pad)
        w = jnp.zeros((prev_out_pad, out_pad), jnp.float32)
        w = w.at[:fan_in, :fan_out].set(ws[li])
        b = jnp.zeros((1, out_pad), jnp.float32).at[0, :fan_out].set(bs[li])
        ws_p.append(w.astype(jnp.bfloat16))
        bs_p.append(b)
        prev_out_pad = out_pad
    return ws_p, bs_p


def reference_forward(x, ws, bs):
    h = x
    for li in range(len(ws)):
        h = h @ ws[li] + bs[li]
        if li < len(ws) - 1:
            h = jax.nn.relu(h)
    return h


if __name__ == "__main__":
    key = jax.random.PRNGKey(0)
    k_x, k_p = jax.random.split(key)

    batch, state_size, action_size = 64, 8, 4
    fc_units = (64, 64)

    x = jax.random.normal(k_x, (batch, state_size), jnp.float32)
    ws, bs = init_params(k_p, state_size, action_size, fc_units)
    ws_p, bs_p = pad_and_cast_params(ws, bs)

    q = qnetwork_forward(x, ws_p, bs_p, action_size, tile_b=256)
    q = jax.block_until_ready(q)

    q_ref = reference_forward(x, ws, bs)
    assert q.shape == (batch, action_size), q.shape
    max_err = float(jnp.max(jnp.abs(q - q_ref)))
    # bf16 weights/activations with f32 accumulation: loosened tolerance.
    assert max_err < 3e-2, max_err

    print("KERNEL_OK")
</pallas_src>

<mosaic_0001>
module attributes {stable_mosaic.version = 11 : i64} {
  func.func @_qnet_kernel(%arg0: i32, %arg1: memref<64x8xbf16, #tpu.memory_space<vmem>>, %arg2: memref<8x128xbf16, #tpu.memory_space<vmem>>, %arg3: memref<128x128xbf16, #tpu.memory_space<vmem>>, %arg4: memref<128x128xbf16, #tpu.memory_space<vmem>>, %arg5: memref<1x128xf32, #tpu.memory_space<vmem>>, %arg6: memref<1x128xf32, #tpu.memory_space<vmem>>, %arg7: memref<1x128xf32, #tpu.memory_space<vmem>>, %arg8: memref<64x128xf32, #tpu.memory_space<vmem>>) attributes {dimension_semantics = [#tpu.dimension_semantics<arbitrary>], iteration_bounds = array<i64: 1>, scalar_prefetch = 0 : i64, scratch_operands = 0 : i64, tpu.core_type = #tpu.core_type<tc>, window_params = [{transform_indices = @transform_0, window_bounds = array<i64: 64, 8>}, {pipeline_mode = #tpu.pipeline_mode<synchronous>, transform_indices = @transform_1, window_bounds = array<i64: 8, 128>}, {pipeline_mode = #tpu.pipeline_mode<synchronous>, transform_indices = @transform_2, window_bounds = array<i64: 128, 128>}, {pipeline_mode = #tpu.pipeline_mode<synchronous>, transform_indices = @transform_3, window_bounds = array<i64: 128, 128>}, {pipeline_mode = #tpu.pipeline_mode<synchronous>, transform_indices = @transform_4, window_bounds = array<i64: 1, 128>}, {pipeline_mode = #tpu.pipeline_mode<synchronous>, transform_indices = @transform_5, window_bounds = array<i64: 1, 128>}, {pipeline_mode = #tpu.pipeline_mode<synchronous>, transform_indices = @transform_6, window_bounds = array<i64: 1, 128>}, {transform_indices = @transform_7, window_bounds = array<i64: 64, 128>}]} {
    %c0 = arith.constant 0 : index
    %c0_0 = arith.constant 0 : index
    %0 = vector.load %arg1[%c0, %c0_0] : memref<64x8xbf16, #tpu.memory_space<vmem>>, vector<64x8xbf16>
    %c0_1 = arith.constant 0 : index
    %c0_2 = arith.constant 0 : index
    %1 = vector.load %arg2[%c0_1, %c0_2] : memref<8x128xbf16, #tpu.memory_space<vmem>>, vector<8x128xbf16>
    %cst = arith.constant dense<0.000000e+00> : vector<64x128xf32>
    %2 = tpu.matmul %0, %1, %cst {dimension_numbers = #tpu.dot_dimension_numbers<[1], [0], [0], [1], [0, 0, 1, 1], [], []>} : vector<64x8xbf16>, vector<8x128xbf16>, vector<64x128xf32> -> vector<64x128xf32>
    %c0_3 = arith.constant 0 : index
    %c0_4 = arith.constant 0 : index
    %3 = vector.load %arg5[%c0_3, %c0_4] : memref<1x128xf32, #tpu.memory_space<vmem>>, vector<1x128xf32>
    %4 = vector.broadcast %3 : vector<1x128xf32> to vector<64x128xf32>
    %5 = arith.addf %2, %4 : vector<64x128xf32>
    %cst_5 = arith.constant 0.000000e+00 : f32
    %6 = vector.broadcast %cst_5 : f32 to vector<64x128xf32>
    %7 = arith.maximumf %5, %6 : vector<64x128xf32>
    %8 = arith.truncf %7 : vector<64x128xf32> to vector<64x128xbf16>
    %c0_6 = arith.constant 0 : index
    %c0_7 = arith.constant 0 : index
    %9 = vector.load %arg3[%c0_6, %c0_7] : memref<128x128xbf16, #tpu.memory_space<vmem>>, vector<128x128xbf16>
    %cst_8 = arith.constant dense<0.000000e+00> : vector<64x128xf32>
    %10 = tpu.matmul %8, %9, %cst_8 {dimension_numbers = #tpu.dot_dimension_numbers<[1], [0], [0], [1], [0, 0, 1, 1], [], []>} : vector<64x128xbf16>, vector<128x128xbf16>, vector<64x128xf32> -> vector<64x128xf32>
    %c0_9 = arith.constant 0 : index
    %c0_10 = arith.constant 0 : index
    %11 = vector.load %arg6[%c0_9, %c0_10] : memref<1x128xf32, #tpu.memory_space<vmem>>, vector<1x128xf32>
    %12 = vector.broadcast %11 : vector<1x128xf32> to vector<64x128xf32>
    %13 = arith.addf %10, %12 : vector<64x128xf32>
    %cst_11 = arith.constant 0.000000e+00 : f32
    %14 = vector.broadcast %cst_11 : f32 to vector<64x128xf32>
    %15 = arith.maximumf %13, %14 : vector<64x128xf32>
    %16 = arith.truncf %15 : vector<64x128xf32> to vector<64x128xbf16>
    %c0_12 = arith.constant 0 : index
    %c0_13 = arith.constant 0 : index
    %17 = vector.load %arg4[%c0_12, %c0_13] : memref<128x128xbf16, #tpu.memory_space<vmem>>, vector<128x128xbf16>
    %cst_14 = arith.constant dense<0.000000e+00> : vector<64x128xf32>
    %18 = tpu.matmul %16, %17, %cst_14 {dimension_numbers = #tpu.dot_dimension_numbers<[1], [0], [0], [1], [0, 0, 1, 1], [], []>} : vector<64x128xbf16>, vector<128x128xbf16>, vector<64x128xf32> -> vector<64x128xf32>
    %c0_15 = arith.constant 0 : index
    %c0_16 = arith.constant 0 : index
    %19 = vector.load %arg7[%c0_15, %c0_16] : memref<1x128xf32, #tpu.memory_space<vmem>>, vector<1x128xf32>
    %20 = vector.broadcast %19 : vector<1x128xf32> to vector<64x128xf32>
    %21 = arith.addf %18, %20 : vector<64x128xf32>
    %c0_17 = arith.constant 0 : index
    %c0_18 = arith.constant 0 : index
    %22 = vector.load %arg8[%c0_17, %c0_18] : memref<64x128xf32, #tpu.memory_space<vmem>>, vector<64x128xf32>
    tpu.vector_store %arg8[%c0_17, %c0_18], %21 {strides = array<i32>} : memref<64x128xf32, #tpu.memory_space<vmem>>, vector<64x128xf32>,
    return
  }
  func.func @transform_0(%arg0: i32) -> (i32, i32) {
    %c0_i32 = arith.constant 0 : i32
    %c0_i32_0 = arith.constant 0 : i32
    return %arg0, %c0_i32 : i32, i32
  }
  func.func @transform_1(%arg0: i32) -> (i32, i32) {
    %c0_i32 = arith.constant 0 : i32
    %c0_i32_0 = arith.constant 0 : i32
    %c0_i32_1 = arith.constant 0 : i32
    return %c0_i32, %c0_i32_0 : i32, i32
  }
  func.func @transform_2(%arg0: i32) -> (i32, i32) {
    %c0_i32 = arith.constant 0 : i32
    %c0_i32_0 = arith.constant 0 : i32
    %c0_i32_1 = arith.constant 0 : i32
    return %c0_i32, %c0_i32_0 : i32, i32
  }
  func.func @transform_3(%arg0: i32) -> (i32, i32) {
    %c0_i32 = arith.constant 0 : i32
    %c0_i32_0 = arith.constant 0 : i32
    %c0_i32_1 = arith.constant 0 : i32
    return %c0_i32, %c0_i32_0 : i32, i32
  }
  func.func @transform_4(%arg0: i32) -> (i32, i32) {
    %c0_i32 = arith.constant 0 : i32
    %c0_i32_0 = arith.constant 0 : i32
    %c0_i32_1 = arith.constant 0 : i32
    return %c0_i32, %c0_i32_0 : i32, i32
  }
  func.func @transform_5(%arg0: i32) -> (i32, i32) {
    %c0_i32 = arith.constant 0 : i32
    %c0_i32_0 = arith.constant 0 : i32
    %c0_i32_1 = arith.constant 0 : i32
    return %c0_i32, %c0_i32_0 : i32, i32
  }
  func.func @transform_6(%arg0: i32) -> (i32, i32) {
    %c0_i32 = arith.constant 0 : i32
    %c0_i32_0 = arith.constant 0 : i32
    %c0_i32_1 = arith.constant 0 : i32
    return %c0_i32, %c0_i32_0 : i32, i32
  }
  func.func @transform_7(%arg0: i32) -> (i32, i32) {
    %c0_i32 = arith.constant 0 : i32
    %c0_i32_0 = arith.constant 0 : i32
    return %arg0, %c0_i32 : i32, i32
  }
}

</mosaic_0001>

<bundles_post_ra>
// kernel: tpu_custom_call.1
= control target key start
LH: loop header
LB: loop body
LE: loop exit
PB: predicated region body
PF: predicated region fallthrough
CT: control target
= control target key end

     0   :  { %12 = vsyncpa [#allocation3], 0  ;;  %s788_s0 = inlined_call_operand.vmem [shape: bf16[64,8], index: 0, kind: input, shape index: {}]   ;;  %s789_s1 = inlined_call_operand.vmem [shape: bf16[8,128], index: 1, kind: input, shape index: {}]   ;;  %s790_s2 = inlined_call_operand.hbm [shape: bf16[128,128], index: 2, kind: input, shape index: {}]   ;;  %s791_s3 = inlined_call_operand.hbm [shape: bf16[128,128], index: 3, kind: input, shape index: {}]   ;;  %s792_s4 = inlined_call_operand.vmem [shape: f32[1,128], index: 4, kind: input, shape index: {}]   ;;  %s793_s5 = inlined_call_operand.vmem [shape: f32[1,128], index: 5, kind: input, shape index: {}]   ;;  %s794_s6 = inlined_call_operand.vmem [shape: f32[1,128], index: 6, kind: input, shape index: {}]   ;;  %s795_s7 = inlined_call_operand.hbm [shape: f32[64,128], index: 7, kind: output, shape index: {}]  }
   0x1   :  { %13 = vsyncpa [#allocation6], 0 }
   0x2   :  { %14 = vsyncpa [#allocation4], 0  ;;  %s704_s24 = smov [#allocation2]  }
   0x3   :  { %s24_s25 = sshll.u32 %s704_s24, 4  ;;  %s25_s25 = int_to_ptr.vmem [resolvable:$true] %s24_s25 }
   0x4   :  { %s646_s26 = scalar_lea.vmem %s25_s25, 1024  ;;  %p651_p1 = scmp.lt.s32.totalorder %s25_s25, %s25_s25 }
   0x5   :  { %p647_p0 = scmp.ne.s32.totalorder %s25_s25, %s646_s26  ;;  %p652_p2 = scmp.lt.s32.totalorder %s646_s26, %s646_s26 }
   0x7   :  { %p653_p3 = por %p652_p2, %p651_p1 }
   0x9   :  { %p654_p4 = pnand %p653_p3, %p647_p0 }
   0xb   :  { %657 = shalt.err (!%p654_p4)
}
   0xc   :  { %s705_s27 = smov 64   ;;  %s706_s28 = smov 4  }
   0xd   :  { %30 = dma.hbm_to_vmem [thread:$0]  %s790_s2, 1024, %s25_s25, [#allocation3], %s705_s27, %s705_s27, %s706_s28  }
   0xe   :  { %s707_s8 = smov [#allocation5]  }
   0xf   :  { %s36_s9 = sshll.u32 %s707_s8, 4  ;;  %s37_s9 = int_to_ptr.vmem [resolvable:$true] %s36_s9 }
  0x10   :  { %s666_s10 = scalar_lea.vmem %s37_s9, 1024  ;;  %p671_p6 = scmp.lt.s32.totalorder %s37_s9, %s37_s9 }
  0x11   :  { %p667_p5 = scmp.ne.s32.totalorder %s37_s9, %s666_s10  ;;  %p672_p7 = scmp.lt.s32.totalorder %s666_s10, %s666_s10 }
  0x13   :  { %p673_p8 = por %p672_p7, %p671_p6 }
  0x15   :  { %p674_p9 = pnand %p673_p8, %p667_p5 }
  0x17   :  { %677 = shalt.err (!%p674_p9)
}
  0x18   :  { %42 = dma.hbm_to_vmem [thread:$0]  %s791_s3, 1024, %s37_s9, [#allocation6], %s705_s27, %s705_s27, %s706_s28  }
  0x19   :  { %698 = dma.done.wait [#allocation3], 1024  }
  0x1a   :  { %699 = vsyncadd [#allocation3], 4294966272 }
  0x1b   :  { %700 = dma.done.wait [#allocation6], 1024  }
  0x1c   :  { %701 = vsyncadd [#allocation6], 4294966272  ;;  %vm105_vm0 = vcmask 1043456   ;;  %vm92_vm1 = vcmask 64512   ;;  %v64_v0 = vld [vmem:[%s789_s1] sm:$0xf] }
  0x1d   :  { %610 = vmatprep.subr.msk.bf16.mxu0 %vm105_vm0, %v64_v0  ;;  %v107_v1 = vsel %vm105_vm0, %v64_v0, 0  ;;  %v618_v2 = vld [vmem:[%s788_s0] sm:$0xff]   ;;  %v619_v3 = vld [vmem:[%s788_s0 + $0x8] sm:$0xff]   ;;  %v620_v4 = vld [vmem:[%s788_s0 + $0x10] sm:$0xff]   ;;  %s708_s23 = smov [#allocation7]  }
  0x1e   :  { %553 = vmatpush3.bf16.msra.mxu0 %v107_v1  ;;  %554 = vmatprep.mubr.msk.bf16.mxu0 %vm92_vm1, %v618_v2  ;;  %v622_v5 = vld [vmem:[#allocation2 + $0x38] sm:$0xff]   ;;  %v623_v6 = vld [vmem:[#allocation2 + $0x30] sm:$0xff]   ;;  %v624_v8 = vld [vmem:[#allocation2 + $0x28] sm:$0xff]   ;;  %s483_s24 = sshll.u32 %s708_s23, 4  ;;  %s484_s24 = int_to_ptr.vmem [resolvable:$true] %s483_s24 }
  0x1f   :  { %562 = vmatprep.subr.bf16.mxu1 %v622_v5  ;;  %v621_v7 = vld [vmem:[%s788_s0 + $0x18] sm:$0xff]   ;;  %v625_v9 = vld [vmem:[#allocation2 + $0x20] sm:$0xff]   ;;  %v627_v11 = vld [vmem:[#allocation2 + $0x10] sm:$0xff]   ;;  %p683_p11 = scmp.lt.s32.totalorder %s484_s24, %s484_s24 }
  0x20   :  { %563 = vmatpush3.bf16.msra.mxu1 %v622_v5  ;;  %v626_v10 = vld [vmem:[#allocation2 + $0x18] sm:$0xff]   ;;  %v628_v12 = vld [vmem:[#allocation2 + $0x8] sm:$0xff]   ;;  %v629_v13 = vld [vmem:[#allocation2] sm:$0xff]  }
  0x21   :  { %555 = vmatmul.mubr.msk.bf16.vlgmr.msra.gmra.mxu0 %vm92_vm1, %v619_v3  ;;  %564 = vmatprep.subr.bf16.mxu1 %v623_v6  ;;  %v630_v14 = vld [vmem:[#allocation5 + $0x38] sm:$0xff]   ;;  %v631_v15 = vld [vmem:[#allocation5 + $0x30] sm:$0xff]   ;;  %v632_v16 = vld [vmem:[#allocation5 + $0x28] sm:$0xff]  }
  0x22   :  { %558 = vmatprep.mubr.msk.bf16.mxu0 %vm92_vm1, %v620_v4  ;;  %586 = vmatprep.subr.bf16.mxu0 %v630_v14  ;;  %v633_v17 = vld [vmem:[#allocation5 + $0x20] sm:$0xff]   ;;  %v634_v18 = vld [vmem:[#allocation5 + $0x18] sm:$0xff]   ;;  %v635_v48 = vld [vmem:[#allocation5 + $0x10] sm:$0xff]  }
  0x23   :  { %587 = vmatpush3.bf16.msra.mxu0 %v630_v14  ;;  %v496_v21 = vld [vmem:[%s792_s4] ss:$0 sm:$0xff]  ;;  %v636_v49 = vld [vmem:[#allocation5 + $0x8] sm:$0xff]  }
  0x24   :  { %565 = vmatpush3.bf16.msra.mxu1 %v623_v6  ;;  %588 = vmatprep.subr.bf16.mxu0 %v631_v15  ;;  %v637_v50 = vld [vmem:[#allocation5] sm:$0xff]  }
  0x25   :  { %566 = vmatprep.subr.bf16.mxu1 %v624_v8  ;;  %v505_v53 = vld [vmem:[%s793_s5] ss:$0 sm:$0xff] }
  0x27   :  { %589 = vmatpush3.bf16.msra.mxu0 %v631_v15 }
  0x28   :  { %567 = vmatpush3.bf16.msra.mxu1 %v624_v8  ;;  %590 = vmatprep.subr.bf16.mxu0 %v632_v16 }
  0x29   :  { %559 = vmatmul.mubr.msk.bf16.gmra.mxu0 %vm92_vm1, %v621_v7  ;;  %568 = vmatprep.subr.bf16.mxu1 %v625_v9 }
  0x2b   :  { %591 = vmatpush3.bf16.msra.mxu0 %v632_v16  ;;  %v514_v16 = vld [vmem:[%s794_s6] ss:$0 sm:$0xff]  ;;  %s678_s6 = scalar_lea.vmem %s484_s24, 1024 }
  0x2c   :  { %569 = vmatpush3.bf16.msra.mxu1 %v625_v9  ;;  %592 = vmatprep.subr.bf16.mxu0 %v633_v17  ;;  %p679_p10 = scmp.ne.s32.totalorder %s484_s24, %s678_s6  ;;  %p684_p12 = scmp.lt.s32.totalorder %s678_s6, %s678_s6 }
  0x2d   :  { %570 = vmatprep.subr.bf16.mxu1 %v626_v10 }
  0x2e   :  { %p685_p13 = por %p684_p12, %p683_p11 }
  0x2f   :  { %593 = vmatpush3.bf16.msra.mxu0 %v633_v17 }
  0x30   :  { %571 = vmatpush3.bf16.msra.mxu1 %v626_v10  ;;  %594 = vmatprep.subr.bf16.mxu0 %v634_v18  ;;  %p686_p0 = pnand %p685_p13, %p679_p10 }
  0x31   :  { %572 = vmatprep.subr.bf16.mxu1 %v627_v11 }
  0x33   :  { %595 = vmatpush3.bf16.msra.mxu0 %v634_v18 }
  0x34   :  { %573 = vmatpush3.bf16.msra.mxu1 %v627_v11  ;;  %596 = vmatprep.subr.bf16.mxu0 %v635_v48 }
  0x35   :  { %574 = vmatprep.subr.bf16.mxu1 %v628_v12 }
  0x37   :  { %597 = vmatpush3.bf16.msra.mxu0 %v635_v48 }
  0x38   :  { %575 = vmatpush3.bf16.msra.mxu1 %v628_v12  ;;  %598 = vmatprep.subr.bf16.mxu0 %v636_v49 }
  0x39   :  { %576 = vmatprep.subr.bf16.mxu1 %v629_v13 }
  0x3b   :  { %599 = vmatpush3.bf16.msra.mxu0 %v636_v49 }
  0x3c   :  { %577 = vmatpush3.bf16.msra.mxu1 %v629_v13  ;;  %600 = vmatprep.subr.bf16.mxu0 %v637_v50 }
  0x3f   :  { %601 = vmatpush3.bf16.msra.mxu0 %v637_v50 }
  0xe1   :  { %v556_v19 = vpop.f32.mrf.mxu0 }
  0xe2   :  { %v152_v25 = vadd.f32 %v556_v19, %v496_v21 }
  0xe3   :  { %v143_v20 = vpop.f32.mrf.mxu0 }
  0xe4   :  { %v144_v23 = vadd.f32 %v496_v21, %v143_v20  ;;  %v176_v32 = vmax.f32 %v152_v25, 0.0 }
  0xe5   :  { %v557_v22 = vpop.f32.mrf.mxu0 }
  0xe6   :  { %v155_v24 = vadd.f32 %v557_v22, %v496_v21  ;;  %v174_v30 = vmax.f32 %v144_v23, 0.0 }
  0xe7   :  { %v146_v26 = vpop.f32.mrf.mxu0 }
  0xe8   :  { %v147_v27 = vadd.f32 %v496_v21, %v146_v26  ;;  %v177_v28 = vmax.f32 %v155_v24, 0.0 }
  0xe9   :  { %v560_v29 = vpop.f32.mrf.mxu0 }
  0xea   :  { %v175_v31 = vmax.f32 %v147_v27, 0.0  ;;  %v183_v35 = vpack.c.bf16 %v177_v28, %v176_v32  ;;  %v168_v39 = vadd.f32 %v560_v29, %v496_v21 }
  0xeb   :  { %v159_v33 = vpop.f32.mrf.mxu0 }
  0xec   :  { %v182_v34 = vpack.c.bf16 %v175_v31, %v174_v30  ;;  %v160_v37 = vadd.f32 %v496_v21, %v159_v33  ;;  %v180_v45 = vmax.f32 %v168_v39, 0.0 }
  0xed   :  { %v561_v36 = vpop.f32.mrf.mxu0 }
  0xee   :  { %v171_v38 = vadd.f32 %v561_v36, %v496_v21  ;;  %578 = vmatprep.mubr.bf16.mxu1 %v182_v34  ;;  %v178_v43 = vmax.f32 %v160_v37, 0.0 }
  0xef   :  { %v162_v40 = vpop.f32.mrf.mxu0  ;;  %579 = vmatmul.mubr.bf16.vlgmr.msra.gmra.mxu1 %v183_v35 }
  0xf0   :  { %v163_v41 = vadd.f32 %v496_v21, %v162_v40  ;;  %v181_v42 = vmax.f32 %v171_v38, 0.0 }
  0xf2   :  { %v179_v44 = vmax.f32 %v163_v41, 0.0  ;;  %v185_v47 = vpack.c.bf16 %v181_v42, %v180_v45 }
  0xf4   :  { %v184_v46 = vpack.c.bf16 %v179_v44, %v178_v43 }
  0xf6   :  { %582 = vmatprep.mubr.bf16.mxu1 %v184_v46 }
  0xf7   :  { %583 = vmatmul.mubr.bf16.gmra.mxu1 %v185_v47 }
 0x1af   :  { %v580_v51 = vpop.f32.mrf.mxu1 }
 0x1b0   :  { %v300_v57 = vadd.f32 %v580_v51, %v505_v53 }
 0x1b1   :  { %v291_v52 = vpop.f32.mrf.mxu1 }
 0x1b2   :  { %v292_v55 = vadd.f32 %v505_v53, %v291_v52  ;;  %v324_v0 = vmax.f32 %v300_v57, 0.0 }
 0x1b3   :  { %v581_v54 = vpop.f32.mrf.mxu1 }
 0x1b4   :  { %v303_v56 = vadd.f32 %v581_v54, %v505_v53  ;;  %v322_v62 = vmax.f32 %v292_v55, 0.0 }
 0x1b5   :  { %v294_v58 = vpop.f32.mrf.mxu1 }
 0x1b6   :  { %v295_v59 = vadd.f32 %v505_v53, %v294_v58  ;;  %v325_v60 = vmax.f32 %v303_v56, 0.0 }
 0x1b7   :  { %v584_v61 = vpop.f32.mrf.mxu1 }
 0x1b8   :  { %v323_v63 = vmax.f32 %v295_v59, 0.0  ;;  %v331_v3 = vpack.c.bf16 %v325_v60, %v324_v0  ;;  %v316_v7 = vadd.f32 %v584_v61, %v505_v53 }
 0x1b9   :  { %v307_v1 = vpop.f32.mrf.mxu1 }
 0x1ba   :  { %v330_v2 = vpack.c.bf16 %v323_v63, %v322_v62  ;;  %v308_v5 = vadd.f32 %v505_v53, %v307_v1  ;;  %v328_v13 = vmax.f32 %v316_v7, 0.0 }
 0x1bb   :  { %v585_v4 = vpop.f32.mrf.mxu1 }
 0x1bc   :  { %v319_v6 = vadd.f32 %v585_v4, %v505_v53  ;;  %602 = vmatprep.mubr.bf16.mxu0 %v330_v2  ;;  %v326_v11 = vmax.f32 %v308_v5, 0.0 }
 0x1bd   :  { %v310_v8 = vpop.f32.mrf.mxu1  ;;  %603 = vmatmul.mubr.bf16.vlgmr.msra.gmra.mxu0 %v331_v3 }
 0x1be   :  { %v311_v9 = vadd.f32 %v505_v53, %v310_v8  ;;  %v329_v10 = vmax.f32 %v319_v6, 0.0 }
 0x1c0   :  { %v327_v12 = vmax.f32 %v311_v9, 0.0  ;;  %v333_v15 = vpack.c.bf16 %v329_v10, %v328_v13 }
 0x1c2   :  { %v332_v14 = vpack.c.bf16 %v327_v12, %v326_v11 }
 0x1c4   :  { %606 = vmatprep.mubr.bf16.mxu0 %v332_v14 }
 0x1c5   :  { %607 = vmatmul.mubr.bf16.gmra.mxu0 %v333_v15 }
 0x27d   :  { %v604_v17 = vpop.f32.mrf.mxu0 }
 0x27e   :  { %v448_v18 = vadd.f32 %v604_v17, %v514_v16 }
 0x27f   :  { %v439_v19 = vpop.f32.mrf.mxu0 }
 0x280   :  { %472 = vst [vmem:[#allocation7 + $0x10] sm:$0xff] %v448_v18  ;;  %v440_v20 = vadd.f32 %v514_v16, %v439_v19 }
 0x281   :  { %v605_v21 = vpop.f32.mrf.mxu0 }
 0x282   :  { %470 = vst [vmem:[#allocation7] sm:$0xff] %v440_v20  ;;  %v451_v22 = vadd.f32 %v605_v21, %v514_v16 }
 0x283   :  { %v442_v23 = vpop.f32.mrf.mxu0 }
 0x284   :  { %473 = vst [vmem:[#allocation7 + $0x18] sm:$0xff] %v451_v22  ;;  %v443_v24 = vadd.f32 %v514_v16, %v442_v23 }
 0x285   :  { %v608_v25 = vpop.f32.mrf.mxu0 }
 0x286   :  { %471 = vst [vmem:[#allocation7 + $0x8] sm:$0xff] %v443_v24  ;;  %v464_v26 = vadd.f32 %v608_v25, %v514_v16 }
 0x287   :  { %v455_v27 = vpop.f32.mrf.mxu0 }
 0x288   :  { %476 = vst [vmem:[#allocation7 + $0x30] sm:$0xff] %v464_v26  ;;  %v456_v28 = vadd.f32 %v514_v16, %v455_v27 }
 0x289   :  { %v609_v29 = vpop.f32.mrf.mxu0 }
 0x28a   :  { %474 = vst [vmem:[#allocation7 + $0x20] sm:$0xff] %v456_v28  ;;  %v467_v30 = vadd.f32 %v609_v29, %v514_v16 }
 0x28b   :  { %v458_v31 = vpop.f32.mrf.mxu0 }
 0x28c   :  { %477 = vst [vmem:[#allocation7 + $0x38] sm:$0xff] %v467_v30  ;;  %v459_v32 = vadd.f32 %v514_v16, %v458_v31 }
 0x28e   :  { %475 = vst [vmem:[#allocation7 + $0x28] sm:$0xff] %v459_v32 }
 0x28f   :  { %689 = shalt.err (!%p686_p0)
}
 0x290   :  { %s709_s25 = smov 128   ;;  %s710_s26 = smov 8  }
 0x291   :  { %489 = dma.vmem_to_hbm [thread:$0]  %s484_s24, 1024, %s795_s7, [#allocation4], %s709_s25, %s709_s25, %s710_s26  }
 0x292   :  { %702 = dma.done.wait [#allocation4], 1024  }
 0x293   :  { %703 = vsyncadd [#allocation4], 4294966272 }
 0x294   :  { %493 = vsyncpa [#allocation3], 1 }
 0x295   :  { %494 = vsyncpa [#allocation6], 1 }
 0x296   :  { %495 = vsyncpa [#allocation4], 1 }

</bundles_post_ra>
